<compile_context>
chip_gen: v7x
topology: tpu7x:2x2x1
jax: 0.10.0
libtpu: 0.0.40
codegen_flags: <defaults>
</compile_context>

<pallas_src>
import functools

import jax
import jax.numpy as jnp
from jax.experimental import pallas as pl
from jax.experimental.pallas import tpu as pltpu

LANE = 128                       # TPU lane width
VMEM_TARGET_BYTES = 48 << 20     # v7x-safe working-set target (64 MiB physical)


def _round_up(n, m):
    return ((n + m - 1) // m) * m


def _is_pre_v6_tpu():
    """True for v5-class and older chips (no bf16 VPU, 128x128 MXU)."""
    try:
        kind = jax.devices()[0].device_kind.lower()
    except Exception:
        return False
    return any(tag in kind for tag in ("v2", "v3", "v4", "v5"))


def _pad_width(d, mxu_tile):
    """Pad a hidden width to a lane/MXU-friendly size without doubling real FLOPs."""
    p = _round_up(d, LANE)
    if mxu_tile > LANE and d > LANE:
        p_mxu = _round_up(d, mxu_tile)
        if p_mxu < 2 * d:        # e.g. 192 -> 256, but 64 stays at 128
            p = p_mxu
    return p


def _make_fused_mlp_kernel(n_layers, compute_dtype, epilogue_dtype):
    """Fused kernel: ((x @ W0 + b0).relu ... ) @ W_{L-1} + b_{L-1}."""

    def kernel(*refs):
        # refs = (x_ref, w0_ref, b0_ref, w1_ref, b1_ref, ..., o_ref)
        x_ref = refs[0]
        o_ref = refs[-1]
        h = x_ref[...].astype(compute_dtype)             # (TB, F) -> bf16 MXU operand
        for i in range(n_layers):
            w = refs[1 + 2 * i][...]                     # (K, N)  bf16, VMEM-resident
            b = refs[2 + 2 * i][...]                     # (1, N)  epilogue dtype
            y = jnp.dot(h, w, preferred_element_type=jnp.float32)  # f32 accumulate
            y = y.astype(epilogue_dtype) + b             # bf16 epilogue on v6e/v7x
            if i < n_layers - 1:
                y = jnp.maximum(y, 0.0)                  # ReLU
                h = y.astype(compute_dtype)
            else:
                h = y
        o_ref[...] = h.astype(o_ref.dtype)

    return kernel


def _estimate_vmem_bytes(tb, feat, x_itemsize, weights, biases, h_dim, out_itemsize):
    """Working-set estimate assuming default double-buffering of every operand."""
    w_bytes = sum(w.shape[0] * w.shape[1] * w.dtype.itemsize for w in weights)
    b_bytes = sum(b.shape[0] * b.shape[1] * b.dtype.itemsize for b in biases)
    x_blk = tb * feat * x_itemsize
    o_blk = tb * h_dim * out_itemsize
    max_w = max([feat, h_dim] + [w.shape[1] for w in weights])
    interm = 4 * tb * max_w * 4                           # f32 intermediates (generous)
    return 2 * (w_bytes + b_bytes + x_blk + o_blk) + interm


def prepare_params(weights, biases, *, bf16_epilogue=None):
    """Pad / transpose-layout / cast parameters ONCE (call outside the jitted fwd).

    `weights[i]` is (in_features, out_features) f32, `biases[i]` is (1, out) f32.
    Zero padding keeps the forward exact (zero rows/cols, zero bias, ReLU(0)=0).
    """
    if bf16_epilogue is None:
        bf16_epilogue = not _is_pre_v6_tpu()
    mxu_tile = 128 if _is_pre_v6_tpu() else 256
    bias_dtype = jnp.bfloat16 if bf16_epilogue else jnp.float32

    n = len(weights)
    real_out = [w.shape[1] for w in weights]
    pad_out = [_pad_width(real_out[i], mxu_tile) if i < n - 1 else real_out[i]
               for i in range(n)]
    pad_in = [weights[0].shape[0]] + pad_out[:-1]         # layer-0 K = real feature dim

    pw, pb = [], []
    for i, (w, b) in enumerate(zip(weights, biases)):
        wp = jnp.zeros((pad_in[i], pad_out[i]), jnp.bfloat16)
        wp = wp.at[: w.shape[0], : w.shape[1]].set(w.astype(jnp.bfloat16))
        bp = jnp.zeros((1, pad_out[i]), bias_dtype)
        bp = bp.at[:, : b.shape[-1]].set(b.reshape(1, -1).astype(bias_dtype))
        pw.append(wp)
        pb.append(bp)
    return tuple(pw), tuple(pb)


@functools.partial(jax.jit,
                   static_argnames=("block_batch", "bf16_epilogue", "out_dtype"))
def contrastive_encoder_forward(x, weights, biases, *, block_batch=1024,
                                bf16_epilogue=True, out_dtype=jnp.bfloat16):
    """Batch-tiled, weight-resident fused MLP forward (params from prepare_params)."""
    n_layers = len(weights)
    batch, feat = x.shape
    assert weights[0].shape[0] == feat, (weights[0].shape, feat)
    h_dim = weights[-1].shape[1]
    compute_dtype = jnp.bfloat16
    epilogue_dtype = jnp.bfloat16 if bf16_epilogue else jnp.float32
    out_itemsize = jnp.dtype(out_dtype).itemsize

    # ---- batch tile selection -------------------------------------------------
    if batch <= LANE:
        tb = batch                                       # single full-dim block
    else:
        tb = min(block_batch, _round_up(batch, LANE))
        tb = max(LANE, (tb // LANE) * LANE)              # multiple of 128 -> unmasked vst
        # >= 2 grid steps so both v7x TensorCores get work under "parallel"
        tb = min(tb, max(LANE, _round_up(pl.cdiv(batch, 2), LANE)))
        # shrink the batch tile (never the weight residency) to fit the VMEM budget
        while tb > LANE and _estimate_vmem_bytes(
                tb, feat, x.dtype.itemsize, weights, biases, h_dim,
                out_itemsize) > VMEM_TARGET_BYTES:
            tb -= LANE

    est = _estimate_vmem_bytes(tb, feat, x.dtype.itemsize, weights, biases, h_dim,
                               out_itemsize)
    vmem_limit = min(max(int(1.5 * est), 32 << 20), 56 << 20)

    # ---- specs ------------------------------------------------------------------
    # x / out: batch-tiled and pipelined.  weights / biases: full-shape blocks with
    # constant index_maps -> fetched once, VMEM-resident across all grid steps.
    in_specs = [pl.BlockSpec((tb, feat), lambda i: (i, 0))]
    operands = [x]
    for w, b in zip(weights, biases):
        in_specs.append(pl.BlockSpec(w.shape, lambda i: (0, 0)))
        in_specs.append(pl.BlockSpec(b.shape, lambda i: (0, 0)))
        operands.append(w)
        operands.append(b)
    out_spec = pl.BlockSpec((tb, h_dim), lambda i: (i, 0))

    return pl.pallas_call(
        _make_fused_mlp_kernel(n_layers, compute_dtype, epilogue_dtype),
        out_shape=jax.ShapeDtypeStruct((batch, h_dim), out_dtype),
        grid=(pl.cdiv(batch, tb),),
        in_specs=in_specs,
        out_specs=out_spec,
        compiler_params=pltpu.CompilerParams(
            dimension_semantics=("parallel",),   # shard batch tiles across v7x's 2 TCs
            vmem_limit_bytes=vmem_limit,
        ),
    )(*operands)


def init_params(key, feature_channel, hidden_list, h_dim):
    """Deterministic init mimicking nn.Linear scale (1/sqrt(fan_in)); f32 masters."""
    dims = [feature_channel] + list(hidden_list) + [h_dim]
    weights, biases = [], []
    for i in range(len(dims) - 1):
        key, kw, kb = jax.random.split(key, 3)
        scale = 1.0 / jnp.sqrt(jnp.float32(dims[i]))
        # stored as (in, out) so the kernel does x @ W
        w = jax.random.uniform(kw, (dims[i], dims[i + 1]), jnp.float32,
                               minval=-scale, maxval=scale)
        b = jax.random.uniform(kb, (1, dims[i + 1]), jnp.float32,
                               minval=-scale, maxval=scale)
        weights.append(w)
        biases.append(b)
    return weights, biases


def reference_forward(x, weights, biases, *, emulate_kernel, bf16_epilogue=True,
                      out_dtype=jnp.bfloat16):
    """Pure-JAX reference.  emulate_kernel=True mirrors the kernel's cast sequence."""
    n = len(weights)
    if not emulate_kernel:
        h = x.astype(jnp.float32)
        for i, (w, b) in enumerate(zip(weights, biases)):
            h = jnp.dot(h, w, preferred_element_type=jnp.float32) + b
            if i < n - 1:
                h = jnp.maximum(h, 0.0)
        return h
    ep = jnp.bfloat16 if bf16_epilogue else jnp.float32
    h = x.astype(jnp.bfloat16)
    for i, (w, b) in enumerate(zip(weights, biases)):
        y = jnp.dot(h, w.astype(jnp.bfloat16), preferred_element_type=jnp.float32)
        y = y.astype(ep) + b.astype(ep)
        if i < n - 1:
            y = jnp.maximum(y, 0.0)
            h = y.astype(jnp.bfloat16)
        else:
            h = y
    return h.astype(out_dtype).astype(jnp.float32)


if __name__ == "__main__":
    # Shapes consistent with the module: feature_channel=32, hidden_list=[64, 64],
    # h_dim=128.  batch=512 exercises a 2-step batch grid (tb=256) + pipelining.
    feature_channel = 32
    hidden_list = [64, 64]
    h_dim = 128
    batch = 512

    key = jax.random.PRNGKey(0)
    key, kx = jax.random.split(key)
    x = jax.random.normal(kx, (batch, feature_channel), jnp.float32)

    weights, biases = init_params(key, feature_channel, hidden_list, h_dim)
    # TODO(synk): if_bn / if_dp branches of FCNet_H (BatchNorm1d / Dropout) are not
    # exercised at default flags and are omitted here.

    bf16_ep = not _is_pre_v6_tpu()          # bf16 epilogue on v6e/v7x, f32 on v5-class
    pw, pb = prepare_params(weights, biases, bf16_epilogue=bf16_ep)

    out = contrastive_encoder_forward(x, pw, pb, bf16_epilogue=bf16_ep,
                                      out_dtype=jnp.bfloat16)
    out = jax.block_until_ready(out)
    assert out.shape == (batch, h_dim), out.shape
    assert out.dtype == jnp.bfloat16, out.dtype
    out_f32 = out.astype(jnp.float32)

    # Tight check against a reference that mirrors the kernel's cast sequence.
    ref_mirror = reference_forward(x, weights, biases, emulate_kernel=True,
                                   bf16_epilogue=bf16_ep, out_dtype=jnp.bfloat16)
    max_diff_mirror = float(jnp.max(jnp.abs(out_f32 - ref_mirror)))
    assert max_diff_mirror < 6e-2, max_diff_mirror

    # Loose sanity check against the pure-f32 PyTorch-equivalent forward.
    ref_f32 = reference_forward(x, weights, biases, emulate_kernel=False)
    max_diff_f32 = float(jnp.max(jnp.abs(out_f32 - ref_f32)))
    assert max_diff_f32 < 1.5e-1, max_diff_f32

    print("KERNEL_OK")
</pallas_src>

<mosaic_0001>
module attributes {stable_mosaic.version = 11 : i64} {
  func.func @kernel(%arg0: i32, %arg1: memref<256x32xf32, #tpu.memory_space<vmem>>, %arg2: memref<32x128xbf16, #tpu.memory_space<vmem>>, %arg3: memref<1x128xbf16, #tpu.memory_space<vmem>>, %arg4: memref<128x128xbf16, #tpu.memory_space<vmem>>, %arg5: memref<1x128xbf16, #tpu.memory_space<vmem>>, %arg6: memref<128x128xbf16, #tpu.memory_space<vmem>>, %arg7: memref<1x128xbf16, #tpu.memory_space<vmem>>, %arg8: memref<256x128xbf16, #tpu.memory_space<vmem>>) attributes {dimension_semantics = [#tpu.dimension_semantics<parallel>], iteration_bounds = array<i64: 2>, scalar_prefetch = 0 : i64, scratch_operands = 0 : i64, tpu.core_type = #tpu.core_type<tc>, window_params = [{transform_indices = @transform_0, window_bounds = array<i64: 256, 32>}, {pipeline_mode = #tpu.pipeline_mode<synchronous>, transform_indices = @transform_1, window_bounds = array<i64: 32, 128>}, {pipeline_mode = #tpu.pipeline_mode<synchronous>, transform_indices = @transform_2, window_bounds = array<i64: 1, 128>}, {pipeline_mode = #tpu.pipeline_mode<synchronous>, transform_indices = @transform_3, window_bounds = array<i64: 128, 128>}, {pipeline_mode = #tpu.pipeline_mode<synchronous>, transform_indices = @transform_4, window_bounds = array<i64: 1, 128>}, {pipeline_mode = #tpu.pipeline_mode<synchronous>, transform_indices = @transform_5, window_bounds = array<i64: 128, 128>}, {pipeline_mode = #tpu.pipeline_mode<synchronous>, transform_indices = @transform_6, window_bounds = array<i64: 1, 128>}, {transform_indices = @transform_7, window_bounds = array<i64: 256, 128>}]} {
    %c0 = arith.constant 0 : index
    %c0_0 = arith.constant 0 : index
    %0 = vector.load %arg1[%c0, %c0_0] : memref<256x32xf32, #tpu.memory_space<vmem>>, vector<256x32xf32>
    %1 = arith.truncf %0 : vector<256x32xf32> to vector<256x32xbf16>
    %c0_1 = arith.constant 0 : index
    %c0_2 = arith.constant 0 : index
    %2 = vector.load %arg2[%c0_1, %c0_2] : memref<32x128xbf16, #tpu.memory_space<vmem>>, vector<32x128xbf16>
    %c0_3 = arith.constant 0 : index
    %c0_4 = arith.constant 0 : index
    %3 = vector.load %arg3[%c0_3, %c0_4] : memref<1x128xbf16, #tpu.memory_space<vmem>>, vector<1x128xbf16>
    %cst = arith.constant dense<0.000000e+00> : vector<256x128xf32>
    %4 = tpu.matmul %1, %2, %cst {dimension_numbers = #tpu.dot_dimension_numbers<[1], [0], [0], [1], [0, 0, 1, 1], [], []>} : vector<256x32xbf16>, vector<32x128xbf16>, vector<256x128xf32> -> vector<256x128xf32>
    %5 = arith.truncf %4 : vector<256x128xf32> to vector<256x128xbf16>
    %6 = vector.broadcast %3 : vector<1x128xbf16> to vector<256x128xbf16>
    %7 = arith.addf %5, %6 : vector<256x128xbf16>
    %cst_5 = arith.constant 0.000000e+00 : bf16
    %8 = vector.broadcast %cst_5 : bf16 to vector<256x128xbf16>
    %9 = arith.maximumf %7, %8 : vector<256x128xbf16>
    %c0_6 = arith.constant 0 : index
    %c0_7 = arith.constant 0 : index
    %10 = vector.load %arg4[%c0_6, %c0_7] : memref<128x128xbf16, #tpu.memory_space<vmem>>, vector<128x128xbf16>
    %c0_8 = arith.constant 0 : index
    %c0_9 = arith.constant 0 : index
    %11 = vector.load %arg5[%c0_8, %c0_9] : memref<1x128xbf16, #tpu.memory_space<vmem>>, vector<1x128xbf16>
    %cst_10 = arith.constant dense<0.000000e+00> : vector<256x128xf32>
    %12 = tpu.matmul %9, %10, %cst_10 {dimension_numbers = #tpu.dot_dimension_numbers<[1], [0], [0], [1], [0, 0, 1, 1], [], []>} : vector<256x128xbf16>, vector<128x128xbf16>, vector<256x128xf32> -> vector<256x128xf32>
    %13 = arith.truncf %12 : vector<256x128xf32> to vector<256x128xbf16>
    %14 = vector.broadcast %11 : vector<1x128xbf16> to vector<256x128xbf16>
    %15 = arith.addf %13, %14 : vector<256x128xbf16>
    %cst_11 = arith.constant 0.000000e+00 : bf16
    %16 = vector.broadcast %cst_11 : bf16 to vector<256x128xbf16>
    %17 = arith.maximumf %15, %16 : vector<256x128xbf16>
    %c0_12 = arith.constant 0 : index
    %c0_13 = arith.constant 0 : index
    %18 = vector.load %arg6[%c0_12, %c0_13] : memref<128x128xbf16, #tpu.memory_space<vmem>>, vector<128x128xbf16>
    %c0_14 = arith.constant 0 : index
    %c0_15 = arith.constant 0 : index
    %19 = vector.load %arg7[%c0_14, %c0_15] : memref<1x128xbf16, #tpu.memory_space<vmem>>, vector<1x128xbf16>
    %cst_16 = arith.constant dense<0.000000e+00> : vector<256x128xf32>
    %20 = tpu.matmul %17, %18, %cst_16 {dimension_numbers = #tpu.dot_dimension_numbers<[1], [0], [0], [1], [0, 0, 1, 1], [], []>} : vector<256x128xbf16>, vector<128x128xbf16>, vector<256x128xf32> -> vector<256x128xf32>
    %21 = arith.truncf %20 : vector<256x128xf32> to vector<256x128xbf16>
    %22 = vector.broadcast %19 : vector<1x128xbf16> to vector<256x128xbf16>
    %23 = arith.addf %21, %22 : vector<256x128xbf16>
    %c0_17 = arith.constant 0 : index
    %c0_18 = arith.constant 0 : index
    %24 = vector.load %arg8[%c0_17, %c0_18] : memref<256x128xbf16, #tpu.memory_space<vmem>>, vector<256x128xbf16>
    tpu.vector_store %arg8[%c0_17, %c0_18], %23 {strides = array<i32>} : memref<256x128xbf16, #tpu.memory_space<vmem>>, vector<256x128xbf16>,
    return
  }
  func.func @transform_0(%arg0: i32) -> (i32, i32) {
    %c0_i32 = arith.constant 0 : i32
    %c0_i32_0 = arith.constant 0 : i32
    return %arg0, %c0_i32 : i32, i32
  }
  func.func @transform_1(%arg0: i32) -> (i32, i32) {
    %c0_i32 = arith.constant 0 : i32
    %c0_i32_0 = arith.constant 0 : i32
    %c0_i32_1 = arith.constant 0 : i32
    return %c0_i32, %c0_i32_0 : i32, i32
  }
  func.func @transform_2(%arg0: i32) -> (i32, i32) {
    %c0_i32 = arith.constant 0 : i32
    %c0_i32_0 = arith.constant 0 : i32
    %c0_i32_1 = arith.constant 0 : i32
    return %c0_i32, %c0_i32_0 : i32, i32
  }
  func.func @transform_3(%arg0: i32) -> (i32, i32) {
    %c0_i32 = arith.constant 0 : i32
    %c0_i32_0 = arith.constant 0 : i32
    %c0_i32_1 = arith.constant 0 : i32
    return %c0_i32, %c0_i32_0 : i32, i32
  }
  func.func @transform_4(%arg0: i32) -> (i32, i32) {
    %c0_i32 = arith.constant 0 : i32
    %c0_i32_0 = arith.constant 0 : i32
    %c0_i32_1 = arith.constant 0 : i32
    return %c0_i32, %c0_i32_0 : i32, i32
  }
  func.func @transform_5(%arg0: i32) -> (i32, i32) {
    %c0_i32 = arith.constant 0 : i32
    %c0_i32_0 = arith.constant 0 : i32
    %c0_i32_1 = arith.constant 0 : i32
    return %c0_i32, %c0_i32_0 : i32, i32
  }
  func.func @transform_6(%arg0: i32) -> (i32, i32) {
    %c0_i32 = arith.constant 0 : i32
    %c0_i32_0 = arith.constant 0 : i32
    %c0_i32_1 = arith.constant 0 : i32
    return %c0_i32, %c0_i32_0 : i32, i32
  }
  func.func @transform_7(%arg0: i32) -> (i32, i32) {
    %c0_i32 = arith.constant 0 : i32
    %c0_i32_0 = arith.constant 0 : i32
    return %arg0, %c0_i32 : i32, i32
  }
}

</mosaic_0001>

<bundles_post_ra>
// kernel: contrastive_encoder_forward.1
= control target key start
LH: loop header
LB: loop body
LE: loop exit
PB: predicated region body
PF: predicated region fallthrough
CT: control target
= control target key end

     0   :  { %12 = vsyncpa [#allocation3], 0  ;;  %s2180_s0 = inlined_call_operand.vmem [shape: f32[512,32], index: 0, kind: input, shape index: {}]   ;;  %s2181_s1 = inlined_call_operand.vmem [shape: bf16[32,128], index: 1, kind: input, shape index: {}]   ;;  %s2182_s2 = inlined_call_operand.vmem [shape: bf16[1,128], index: 2, kind: input, shape index: {}]   ;;  %s2183_s3 = inlined_call_operand.vmem [shape: bf16[128,128], index: 3, kind: input, shape index: {}]   ;;  %s2184_s4 = inlined_call_operand.vmem [shape: bf16[1,128], index: 4, kind: input, shape index: {}]   ;;  %s2185_s5 = inlined_call_operand.vmem [shape: bf16[128,128], index: 5, kind: input, shape index: {}]   ;;  %s2186_s6 = inlined_call_operand.vmem [shape: bf16[1,128], index: 6, kind: input, shape index: {}]   ;;  %s2187_s7 = inlined_call_operand.hbm [shape: bf16[512,128], index: 7, kind: output, shape index: {}]  }
   0x1   :  { %14 = vsyncpa [#allocation3 + $0x1], 0  ;;  %s1826_s24 = smov 0   ;;  %s1828_s25 = smov 0  }
   0x2   :  { %s1830_s26 = smov 0   ;;  %s1832_s27 = smov 0  }
   0x3 LB: > { %s1847_s28 = sadd.s32 4294967295, %s1780_s27   ;;  %s1377_s29 = sadd.s32 4294967294, %s1780_s27   ;;  %s1780_s27 = sphi %s1832_s27, %s2193_s27   ;;  %s1776_s26 = sphi %s1830_s26, %s2192_s26   ;;  %s1772_s25 = sphi %s1828_s25, %s2191_s25   ;;  %s1768_s24 = sphi %s1826_s24, %s2190_s24  }
   0x4   : > { %s1851_s30 = sadd.s32 1, %s1780_s27   ;;  %s179_s8 = sadd.s32 1, %s1776_s26 }
   0x5   : > { %s176_s9 = ssub.s32 %s1780_s27, %s1851_s30  ;;  %p189_p0 = scmp.ne.s32.totalorder %s1776_s26, %s1772_s25 }
   0x6   : > { %p177_p1 = scmp.eq.s32.totalorder %s176_s9, 0  ;;  %p190_p2 = scmp.eq.s32.totalorder %s1847_s28, 1 }
   0x7   : > { %p195_p3 = scmp.ne.s32.totalorder %s1772_s25, %s1768_s24  ;;  %p196_p4 = scmp.eq.s32.totalorder %s1377_s29, 1 }
   0x8   : > { %s1862_s10 = scalar_select %p177_p1, %s1776_s26, %s179_s8  }
   0x9   : > { %p1864_p5 = por %p190_p2, %p189_p0  ;;  %p1868_p6 = por %p196_p4, %p195_p3 }
   0xa   : > { %p1380_p7 = scmp.ge.s32.totalorder %s1780_s27, 1  ;;  %p241_p8 = scmp.lt.s32.totalorder %s1780_s27, 3 }
   0xc   : > { %p242_p9 = pnand %p1380_p7, %p241_p8 }
   0xd   : > { %v1700_v0 = vld [vmem:[%s2181_s1] sm:$0xff] (!%p242_p9)   ;;  %s1382_s15 = sshll.u32 (!%p242_p9), %s1847_s28, 5  ;;  %v1701_v1 = vld [vmem:[%s2181_s1 + $0x8] sm:$0xff] (!%p242_p9)   ;;  %vm346_vm0 = vcmask (!%p242_p9), 261120   ;;  %v1704_v29 = vld [vmem:[%s2183_s3 + $0x10] sm:$0xff] (!%p242_p9)   ;;  %s270_s18 = sand.u32 (!%p242_p9), 1, %s1772_s25  }
   0xe   : > { %245 = sbr.rel (%p242_p9) target bundleno = 764 (0x2fc), region = 48  ;;  %p274_p10 = scmp.lt.s32.totalorder (!%p242_p9), %s1382_s15, 63  ;;  %1522 = vmatprep.subr.bf16.mxu0 (!%p242_p9), %v1700_v0  ;;  %1654 = vmatprep.subr.bf16.mxu1 (!%p242_p9), %v1700_v0  ;;  %v1702_v2 = vld [vmem:[%s2183_s3] sm:$0xff] (!%p242_p9)   ;;  %v1703_v24 = vld [vmem:[%s2183_s3 + $0x8] sm:$0xff] (!%p242_p9)   ;;  %v1705_v38 = vld [vmem:[%s2183_s3 + $0x18] sm:$0xff] (!%p242_p9)  }
   0xf   : > { %1523 = vmatpush3.bf16.msra.mxu0 (!%p242_p9), %v1700_v0  ;;  %1656 = vmatpush3.bf16.msra.mxu1 (!%p242_p9), %v1700_v0  ;;  %v1706_v46 = vld [vmem:[%s2183_s3 + $0x20] sm:$0xff] (!%p242_p9)   ;;  %v1707_v51 = vld [vmem:[%s2183_s3 + $0x28] sm:$0xff] (!%p242_p9)   ;;  %v1708_v56 = vld [vmem:[%s2183_s3 + $0x30] sm:$0xff] (!%p242_p9)   ;;  %v575_v0 = vlaneseq (!%p242_p9)  ;;  %s1381_s19 = sshll.u32 (!%p242_p9), %s270_s18, 7  ;;  %s1455_s21 = sshll.u32 (!%p242_p9), %s1847_s28, 11 }
  0x10   : > { %1524 = vmatprep.subr.bf16.mxu0 (!%p242_p9), %v1701_v1  ;;  %1655 = vmatprep.subr.bf16.mxu1 (!%p242_p9), %v1701_v1  ;;  %v1709_v57 = vld [vmem:[%s2183_s3 + $0x38] sm:$0xff] (!%p242_p9)   ;;  %v1710_v58 = vld [vmem:[%s2185_s5] sm:$0xff] (!%p242_p9)   ;;  %v1711_v59 = vld [vmem:[%s2185_s5 + $0x8] sm:$0xff] (!%p242_p9)   ;;  %s2129_s8 = scalar_lea.hbm (!%p242_p9), %s2187_s7, %s1455_s21  ;;  %s2139_s28 = scalar_lea.sflag (!%p242_p9), [#allocation3], %s270_s18 }
  0x11   : > { %v1712_v60 = vld [vmem:[%s2185_s5 + $0x10] sm:$0xff] (!%p242_p9)   ;;  %v1713_v61 = vld [vmem:[%s2185_s5 + $0x18] sm:$0xff] (!%p242_p9)   ;;  %v1714_v62 = vld [vmem:[%s2185_s5 + $0x20] sm:$0xff] (!%p242_p9)   ;;  %s1783_s13 = smov (!%p242_p9), [#allocation2]  }
  0x12   : > { %v1715_v63 = vld [vmem:[%s2185_s5 + $0x28] sm:$0xff] (!%p242_p9)   ;;  %s1722_s14 = sshll.u32 (!%p242_p9), %s1783_s13, 4  ;;  %s1723_s14 = int_to_ptr.vmem [resolvable:$false] %s1722_s14 }
  0x13   : > { %1525 = vmatpush3.bf16.msra.mxu0 (!%p242_p9), %v1701_v1  ;;  %1657 = vmatpush3.bf16.msra.mxu1 (!%p242_p9), %v1701_v1  ;;  %v576_v1 = vshrl.u32 (!%p242_p9), %v575_v0, 7 }
  0x14   : > { %1558 = vmatprep.subr.bf16.mxu1 (!%p242_p9), %v1702_v2  ;;  %1606 = vmatprep.subr.bf16.mxu0 (!%p242_p9), %v1710_v58 }
  0x15   : > { %s2195_s15 = smov (!%p274_p10, %s1382_s15), 63 }
  0x16   : > { %s1383_s20 = sshll.u32 %s2195_s15, 3  ;;  %s1724_s15 = scalar_lea.vmem %s1723_s14, 4096 }
  0x17   : > { %s1887_s23 = scalar_lea.vmem %s2180_s0, %s1383_s20  ;;  %s2080_s20 = scalar_lea.vmem [#allocation2], %s1381_s19 }
  0x18   : > { %v281_v3 = vld [vmem:[%s1887_s23] sm:$0xff]  ;;  %v282_v4 = vld [vmem:[%s1887_s23 + $0x8] sm:$0xff]  ;;  %v283_v5 = vld [vmem:[%s1887_s23 + $0x10] sm:$0xff]  ;;  %s1315_s22 = sshll.u32 %s2080_s20, 4  ;;  %s2131_s22 = int_to_ptr.vmem [resolvable:$true] %s1315_s22 }
  0x19   : > { %v313_v6 = vpack.c.bf16 %v282_v4, %v281_v3  ;;  %v284_v7 = vld [vmem:[%s1887_s23 + $0x18] sm:$0xff]  ;;  %v285_v8 = vld [vmem:[%s1887_s23 + $0x20] sm:$0xff]  ;;  %v286_v9 = vld [vmem:[%s1887_s23 + $0x28] sm:$0xff]  ;;  %v1979_v4 = vsub.s32 0, %v576_v1  ;;  %s1718_s9 = scalar_lea.vmem %s2131_s22, 2048  ;;  %p1725_p0 = scmp.lt.s32.totalorder %s2131_s22, %s1723_s14 }
  0x1a   : > { %v314_v10 = vpack.c.bf16 %v284_v7, %v283_v5  ;;  %v315_v11 = vpack.c.bf16 %v286_v9, %v285_v8  ;;  %v287_v12 = vld [vmem:[%s1887_s23 + $0x30] sm:$0xff]  ;;  %v288_v13 = vld [vmem:[%s1887_s23 + $0x38] sm:$0xff]  ;;  %v289_v14 = vld [vmem:[%s1887_s23 + $0x40] sm:$0xff]  ;;  %p1719_p11 = scmp.ne.s32.totalorder %s2131_s22, %s1718_s9  ;;  %p1726_p1 = scmp.lt.s32.totalorder %s1724_s15, %s1718_s9 }
  0x1b   : > { %1526 = vmatprep.mubr.msk.bf16.mxu0 %vm346_vm0, %v313_v6  ;;  %v290_v15 = vld [vmem:[%s1887_s23 + $0x48] sm:$0xff]  ;;  %v297_v16 = vld [vmem:[%s1887_s23 + $0x80] sm:$0xff]  ;;  %v299_v19 = vld [vmem:[%s1887_s23 + $0x90] sm:$0xff]  ;;  %v316_v25 = vpack.c.bf16 %v288_v13, %v287_v12 }
  0x1c   : > { %1527 = vmatmul.mubr.msk.bf16.vlgmr.msra.gmra.mrb[0].mxu0 %vm346_vm0, %v314_v10  ;;  %v298_v17 = vld [vmem:[%s1887_s23 + $0x88] sm:$0xff]  ;;  %v300_v20 = vld [vmem:[%s1887_s23 + $0x98] sm:$0xff]  ;;  %v301_v21 = vld [vmem:[%s1887_s23 + $0xa0] sm:$0xff]  ;;  %v317_v27 = vpack.c.bf16 %v290_v15, %v289_v14  ;;  %p1720_p12 = pnand %p1719_p11, %p1864_p5  ;;  %p1727_p2 = por %p1726_p1, %p1725_p0 }
  0x1d   : > { %1530 = vmatprep.mubr.msk.bf16.mxu0 %vm346_vm0, %v315_v11  ;;  %v321_v18 = vpack.c.bf16 %v298_v17, %v297_v16  ;;  %v322_v22 = vpack.c.bf16 %v300_v20, %v299_v19  ;;  %v302_v23 = vld [vmem:[%s1887_s23 + $0xa8] sm:$0xff]  ;;  %v303_v28 = vld [vmem:[%s1887_s23 + $0xb0] sm:$0xff]  ;;  %v304_v30 = vld [vmem:[%s1887_s23 + $0xb8] sm:$0xff]  ;;  %1607 = vmatpush3.bf16.msra.mxu0 %v1710_v58 }
  0x1e   : > { %v323_v26 = vpack.c.bf16 %v302_v23, %v301_v21  ;;  %v305_v31 = vld [vmem:[%s1887_s23 + $0xc0] sm:$0xff]  ;;  %v291_v32 = vld [vmem:[%s1887_s23 + $0x50] sm:$0xff]  ;;  %v292_v33 = vld [vmem:[%s1887_s23 + $0x58] sm:$0xff]  ;;  %v324_v37 = vpack.c.bf16 %v304_v30, %v303_v28  ;;  %1608 = vmatprep.subr.bf16.mxu0 %v1711_v59  ;;  %p1721_p13 = pneg %p1720_p12 }
  0x1f   : > { %1542 = vmatprep.mubr.msk.bf16.mxu1 %vm346_vm0, %v321_v18  ;;  %v306_v34 = vld [vmem:[%s1887_s23 + $0xc8] sm:$0xff]  ;;  %v293_v35 = vld [vmem:[%s1887_s23 + $0x60] sm:$0xff]  ;;  %v318_v40 = vpack.c.bf16 %v292_v33, %v291_v32  ;;  %v307_v42 = vld [vmem:[%s1887_s23 + $0xd0] sm:$0xff]  ;;  %v1782_v18 = vmov 0  }
  0x20   : > { %1543 = vmatmul.mubr.msk.bf16.vlgmr.msra.gmra.mrb[0].mxu1 %vm346_vm0, %v322_v22  ;;  %v294_v36 = vld [vmem:[%s1887_s23 + $0x68] sm:$0xff]  ;;  %v325_v39 = vpack.c.bf16 %v306_v34, %v305_v31  ;;  %v308_v43 = vld [vmem:[%s1887_s23 + $0xd8] sm:$0xff]  ;;  %v309_v44 = vld [vmem:[%s1887_s23 + $0xe0] sm:$0xff]  ;;  %p1728_p3 = pnand %p1727_p2, %p1721_p13 }
  0x21   : > { %1546 = vmatprep.mubr.msk.bf16.mxu1 %vm346_vm0, %v323_v26  ;;  %1559 = vmatpush3.bf16.msra.mxu1 %v1702_v2  ;;  %v319_v41 = vpack.c.bf16 %v294_v36, %v293_v35  ;;  %v310_v45 = vld [vmem:[%s1887_s23 + $0xe8] sm:$0xff]  ;;  %v295_v47 = vld [vmem:[%s1887_s23 + $0x70] sm:$0xff]  ;;  %v296_v48 = vld [vmem:[%s1887_s23 + $0x78] sm:$0xff]  ;;  %v326_v49 = vpack.c.bf16 %v308_v43, %v307_v42 }
  0x22   : > { %1560 = vmatprep.subr.bf16.mxu1 %v1703_v24  ;;  %v327_v50 = vpack.c.bf16 %v310_v45, %v309_v44  ;;  %v320_v52 = vpack.c.bf16 %v296_v48, %v295_v47  ;;  %v311_v53 = vld [vmem:[%s1887_s23 + $0xf0] sm:$0xff]  ;;  %v312_v54 = vld [vmem:[%s1887_s23 + $0xf8] sm:$0xff]  ;;  %1609 = vmatpush3.bf16.msra.mxu0 %v1711_v59  ;;  %v333_v2 = vld [vmem:[%s2182_s2] sm:$0x1] }
  0x23   : > { %v328_v55 = vpack.c.bf16 %v312_v54, %v311_v53  ;;  %1610 = vmatprep.subr.bf16.mxu0 %v1712_v60  ;;  %v573_v3 = vpack.i.b16 %v333_v2, %v333_v2 }
  0x24   : > { %1531 = vmatmul.mubr.msk.bf16.gmra.mrb[4].mxu0 %vm346_vm0, %v316_v25 }
  0x25   : > { %1534 = vmatprep.mubr.msk.bf16.mxu0 %vm346_vm0, %v317_v27  ;;  %1561 = vmatpush3.bf16.msra.mxu1 %v1703_v24  ;;  %v1982_v7 = vrot.slane %v573_v3, %v1979_v4 }
  0x26   : > { %1562 = vmatprep.subr.bf16.mxu1 %v1704_v29  ;;  %1611 = vmatpush3.bf16.msra.mxu0 %v1712_v60 }
  0x27   : > { %1612 = vmatprep.subr.bf16.mxu0 %v1713_v61 }
  0x28   : > { %1547 = vmatmul.mubr.msk.bf16.gmra.mrb[4].mxu1 %vm346_vm0, %v324_v37 }
  0x29   : > { %1550 = vmatprep.mubr.msk.bf16.mxu1 %vm346_vm0, %v325_v39  ;;  %1563 = vmatpush3.bf16.msra.mxu1 %v1704_v29 }
  0x2a   : > { %1564 = vmatprep.subr.bf16.mxu1 %v1705_v38  ;;  %1613 = vmatpush3.bf16.msra.mxu0 %v1713_v61 }
  0x2b   : > { %1614 = vmatprep.subr.bf16.mxu0 %v1714_v62 }
  0x2c   : > { %1535 = vmatmul.mubr.msk.bf16.gmra.mrb[8].mxu0 %vm346_vm0, %v318_v40 }
  0x2d   : > { %1538 = vmatprep.mubr.msk.bf16.mxu0 %vm346_vm0, %v319_v41  ;;  %1565 = vmatpush3.bf16.msra.mxu1 %v1705_v38 }
  0x2e   : > { %1566 = vmatprep.subr.bf16.mxu1 %v1706_v46  ;;  %1615 = vmatpush3.bf16.msra.mxu0 %v1714_v62 }
  0x2f   : > { %1616 = vmatprep.subr.bf16.mxu0 %v1715_v63 }
  0x30   : > { %1551 = vmatmul.mubr.msk.bf16.gmra.mrb[8].mxu1 %vm346_vm0, %v326_v49 }
  0x31   : > { %1554 = vmatprep.mubr.msk.bf16.mxu1 %vm346_vm0, %v327_v50  ;;  %1567 = vmatpush3.bf16.msra.mxu1 %v1706_v46 }
  0x32   : > { %1568 = vmatprep.subr.bf16.mxu1 %v1707_v51  ;;  %1617 = vmatpush3.bf16.msra.mxu0 %v1715_v63 }
  0x34   : > { %1539 = vmatmul.mubr.msk.bf16.gmra.mrb[12].mxu0 %vm346_vm0, %v320_v52 }
  0x35   : > { %1569 = vmatpush3.bf16.msra.mxu1 %v1707_v51 }
  0x36   : > { %1570 = vmatprep.subr.bf16.mxu1 %v1708_v56 }
  0x38   : > { %1555 = vmatmul.mubr.msk.bf16.gmra.mrb[12].mxu1 %vm346_vm0, %v328_v55 }
  0x39   : > { %1571 = vmatpush3.bf16.msra.mxu1 %v1708_v56 }
  0x3a   : > { %1572 = vmatprep.subr.bf16.mxu1 %v1709_v57 }
  0x3d   : > { %1573 = vmatpush3.bf16.msra.mxu1 %v1709_v57 }
  0xef   : > { %v1528_v5 = vpop.f32.mrb[0].mxu0 }
  0xf0   : > { %v429_v6 = vpop.f32.mrb[1].mxu0 }
  0xf1   : > { %v1529_v8 = vpop.f32.mrb[2].mxu0 }
  0xf2   : > { %v557_v9 = vpack.c.bf16 %v1529_v8, %v1528_v5  ;;  %v432_v10 = vpop.f32.mrb[3].mxu0 }
  0xf3   : > { %v556_v11 = vpack.c.bf16 %v432_v10, %v429_v6  ;;  %v1985_v13 = vpop.f32.mrb[0].mxu1 }
  0xf4   : > { %v580_v12 = vadd.bf16 %v1982_v7, %v557_v9  ;;  %v493_v15 = vpop.f32.mrb[1].mxu1 }
  0xf5   : > { %v579_v14 = vadd.bf16 %v1982_v7, %v556_v11  ;;  %v1988_v16 = vpop.f32.mrb[2].mxu1 }
  0xf6   : > { %v565_v20 = vpack.c.bf16 %v1988_v16, %v1985_v13  ;;  %v496_v21 = vpop.f32.mrb[3].mxu1  ;;  %v596_v22 = vmax.bf16 %v1782_v18, %v580_v12 }
  0xf7   : > { %v1532_v17 = vpop.f32.mrb[4].mxu0  ;;  %v595_v19 = vmax.bf16 %v1782_v18, %v579_v14  ;;  %v564_v24 = vpack.c.bf16 %v496_v21, %v493_v15 }
  0xf8   : > { %v445_v23 = vpop.f32.mrb[5].mxu0  ;;  %v588_v12 = vadd.bf16 %v1982_v7, %v565_v20 }
  0xf9   : > { %v1533_v25 = vpop.f32.mrb[6].mxu0  ;;  %1574 = vmatprep.mubr.bf16.mxu1 %v595_v19  ;;  %v587_v61 = vadd.bf16 %v1982_v7, %v564_v24 }
  0xfa   : > { %v559_v26 = vpack.c.bf16 %v1533_v25, %v1532_v17  ;;  %v448_v27 = vpop.f32.mrb[7].mxu0  ;;  %1575 = vmatmul.mubr.bf16.vlgmr.msra.gmra.mrb[16].mxu1 %v596_v22  ;;  %v604_v15 = vmax.bf16 %v1782_v18, %v588_v12 }
  0xfb   : > { %v558_v28 = vpack.c.bf16 %v448_v27, %v445_v23  ;;  %v1548_v30 = vpop.f32.mrb[4].mxu1  ;;  %v603_v5 = vmax.bf16 %v1782_v18, %v587_v61  ;;  %v1717_v27 = vld [vmem:[%s2185_s5 + $0x38] sm:$0xff]  }
  0xfc   : > { %v582_v29 = vadd.bf16 %v1982_v7, %v559_v26  ;;  %v509_v32 = vpop.f32.mrb[5].mxu1  ;;  %v1716_v26 = vld [vmem:[%s2185_s5 + $0x30] sm:$0xff]  }
  0xfd   : > { %v581_v31 = vadd.bf16 %v1982_v7, %v558_v28  ;;  %v1549_v33 = vpop.f32.mrb[6].mxu1  ;;  %1618 = vmatprep.subr.bf16.mxu0 %v1716_v26  ;;  %v627_v28 = vld [vmem:[%s2184_s4] sm:$0x1] }
  0xfe   : > { %v567_v36 = vpack.c.bf16 %v1549_v33, %v1548_v30  ;;  %v512_v37 = vpop.f32.mrb[7].mxu1  ;;  %v598_v39 = vmax.bf16 %v1782_v18, %v582_v29  ;;  %1619 = vmatpush3.bf16.msra.mxu0 %v1716_v26 }
  0xff   : > { %v1536_v34 = vpop.f32.mrb[8].mxu0  ;;  %v597_v35 = vmax.bf16 %v1782_v18, %v581_v31  ;;  %v566_v40 = vpack.c.bf16 %v512_v37, %v509_v32  ;;  %1620 = vmatprep.subr.bf16.mxu0 %v1717_v27 }
 0x100   : > { %v461_v38 = vpop.f32.mrb[9].mxu0  ;;  %v590_v19 = vadd.bf16 %v1982_v7, %v567_v36 }
 0x101   : > { %v1537_v41 = vpop.f32.mrb[10].mxu0  ;;  %1578 = vmatprep.mubr.bf16.mxu1 %v597_v35  ;;  %v589_v11 = vadd.bf16 %v1982_v7, %v566_v40 }
 0x102   : > { %v561_v42 = vpack.c.bf16 %v1537_v41, %v1536_v34  ;;  %v464_v43 = vpop.f32.mrb[11].mxu0  ;;  %1579 = vmatmul.mubr.bf16.gmra.mrb[20].mxu1 %v598_v39  ;;  %v606_v22 = vmax.bf16 %v1782_v18, %v590_v19  ;;  %1621 = vmatpush3.bf16.msra.mxu0 %v1717_v27 }
 0x103   : > { %v560_v44 = vpack.c.bf16 %v464_v43, %v461_v38  ;;  %v1552_v46 = vpop.f32.mrb[8].mxu1  ;;  %v605_v14 = vmax.bf16 %v1782_v18, %v589_v11 }
 0x104   : > { %v584_v45 = vadd.bf16 %v1982_v7, %v561_v42  ;;  %v525_v48 = vpop.f32.mrb[9].mxu1 }
 0x105   : > { %v583_v47 = vadd.bf16 %v1982_v7, %v560_v44  ;;  %v1553_v49 = vpop.f32.mrb[10].mxu1 }
 0x106   : > { %v569_v52 = vpack.c.bf16 %v1553_v49, %v1552_v46  ;;  %v528_v53 = vpop.f32.mrb[11].mxu1  ;;  %v600_v55 = vmax.bf16 %v1782_v18, %v584_v45 }
 0x107   : > { %v1540_v50 = vpop.f32.mrb[12].mxu0  ;;  %v599_v51 = vmax.bf16 %v1782_v18, %v583_v47  ;;  %v568_v56 = vpack.c.bf16 %v528_v53, %v525_v48 }
 0x108   : > { %v477_v54 = vpop.f32.mrb[13].mxu0  ;;  %v592_v16 = vadd.bf16 %v1982_v7, %v569_v52 }
 0x109   : > { %v1541_v57 = vpop.f32.mrb[14].mxu0  ;;  %1582 = vmatprep.mubr.bf16.mxu1 %v599_v51  ;;  %v591_v17 = vadd.bf16 %v1982_v7, %v568_v56 }
 0x10a   : > { %v563_v58 = vpack.c.bf16 %v1541_v57, %v1540_v50  ;;  %v480_v59 = vpop.f32.mrb[15].mxu0  ;;  %1583 = vmatmul.mubr.bf16.gmra.mrb[24].mxu1 %v600_v55  ;;  %v608_v23 = vmax.bf16 %v1782_v18, %v592_v16 }
 0x10b   : > { %v562_v60 = vpack.c.bf16 %v480_v59, %v477_v54  ;;  %v1556_v63 = vpop.f32.mrb[12].mxu1  ;;  %v607_v21 = vmax.bf16 %v1782_v18, %v591_v17 }
 0x10c   : > { %v586_v62 = vadd.bf16 %v1982_v7, %v563_v58  ;;  %v541_v1 = vpop.f32.mrb[13].mxu1 }
 0x10d   : > { %v585_v0 = vadd.bf16 %v1982_v7, %v562_v60  ;;  %v1557_v2 = vpop.f32.mrb[14].mxu1 }
 0x10e   : > { %v571_v6 = vpack.c.bf16 %v1557_v2, %v1556_v63  ;;  %v544_v8 = vpop.f32.mrb[15].mxu1  ;;  %v602_v9 = vmax.bf16 %v1782_v18, %v586_v62 }
 0x10f   : > { %v601_v3 = vmax.bf16 %v1782_v18, %v585_v0  ;;  %v570_v10 = vpack.c.bf16 %v544_v8, %v541_v1 }
 0x110   : > { %v594_v24 = vadd.bf16 %v1982_v7, %v571_v6 }
 0x111   : > { %1586 = vmatprep.mubr.bf16.mxu1 %v601_v3  ;;  %v593_v13 = vadd.bf16 %v1982_v7, %v570_v10  ;;  %v854_v7 = vpack.i.b16 %v627_v28, %v627_v28 }
 0x112   : > { %1587 = vmatmul.mubr.bf16.gmra.mrb[28].mxu1 %v602_v9  ;;  %v610_v25 = vmax.bf16 %v1782_v18, %v594_v24 }
 0x113   : > { %1590 = vmatprep.mubr.bf16.mxu1 %v603_v5  ;;  %v609_v20 = vmax.bf16 %v1782_v18, %v593_v13  ;;  %v2035_v31 = vrot.slane %v854_v7, %v1979_v4 }
 0x11a   : > { %1591 = vmatmul.mubr.bf16.gmra.mrb[32].mxu1 %v604_v15 }
 0x11b   : > { %1594 = vmatprep.mubr.bf16.mxu1 %v605_v14 }
 0x122   : > { %1595 = vmatmul.mubr.bf16.gmra.mrb[36].mxu1 %v606_v22 }
 0x123   : > { %1598 = vmatprep.mubr.bf16.mxu1 %v607_v21 }
 0x12a   : > { %1599 = vmatmul.mubr.bf16.gmra.mrb[40].mxu1 %v608_v23 }
 0x12b   : > { %1602 = vmatprep.mubr.bf16.mxu1 %v609_v20 }
 0x132   : > { %1603 = vmatmul.mubr.bf16.gmra.mrb[44].mxu1 %v610_v25 }
 0x1cd   : > { %v1576_v29 = vpop.f32.mrb[16].mxu1 }
 0x1ce   : > { %v710_v30 = vpop.f32.mrb[17].mxu1 }
 0x1cf   : > { %v1577_v32 = vpop.f32.mrb[18].mxu1 }
 0x1d0   : > { %v838_v33 = vpack.c.bf16 %v1577_v32, %v1576_v29  ;;  %v713_v34 = vpop.f32.mrb[19].mxu1 }
 0x1d1   : > { %v837_v35 = vpack.c.bf16 %v713_v34, %v710_v30 }
 0x1d2   : > { %v861_v36 = vadd.bf16 %v2035_v31, %v838_v33 }
 0x1d3   : > { %v860_v37 = vadd.bf16 %v2035_v31, %v837_v35 }
 0x1d4   : > { %v877_v40 = vmax.bf16 %v1782_v18, %v861_v36 }
 0x1d5   : > { %v1580_v38 = vpop.f32.mrb[20].mxu1  ;;  %v876_v39 = vmax.bf16 %v1782_v18, %v860_v37 }
 0x1d6   : > { %v726_v41 = vpop.f32.mrb[21].mxu1 }
 0x1d7   : > { %v1581_v42 = vpop.f32.mrb[22].mxu1  ;;  %1622 = vmatprep.mubr.bf16.mxu0 %v876_v39 }
 0x1d8   : > { %v840_v43 = vpack.c.bf16 %v1581_v42, %v1580_v38  ;;  %v729_v44 = vpop.f32.mrb[23].mxu1  ;;  %1623 = vmatmul.mubr.bf16.vlgmr.msra.gmra.mrb[16].mxu0 %v877_v40 }
 0x1d9   : > { %v839_v45 = vpack.c.bf16 %v729_v44, %v726_v41 }
 0x1da   : > { %v863_v46 = vadd.bf16 %v2035_v31, %v840_v43 }
 0x1db   : > { %v862_v47 = vadd.bf16 %v2035_v31, %v839_v45 }
 0x1dc   : > { %v879_v51 = vmax.bf16 %v1782_v18, %v863_v46 }
 0x1dd   : > { %v1584_v48 = vpop.f32.mrb[24].mxu1  ;;  %v878_v49 = vmax.bf16 %v1782_v18, %v862_v47 }
 0x1de   : > { %v742_v50 = vpop.f32.mrb[25].mxu1 }
 0x1df   : > { %v1585_v52 = vpop.f32.mrb[26].mxu1  ;;  %1626 = vmatprep.mubr.bf16.mxu0 %v878_v49  ;;  %v908_v49 = vld [vmem:[%s2186_s6] sm:$0x1] }
 0x1e0   : > { %v842_v53 = vpack.c.bf16 %v1585_v52, %v1584_v48  ;;  %v745_v54 = vpop.f32.mrb[27].mxu1  ;;  %1627 = vmatmul.mubr.bf16.gmra.mrb[20].mxu0 %v879_v51 }
 0x1e1   : > { %v841_v55 = vpack.c.bf16 %v745_v54, %v742_v50  ;;  %v1135_v50 = vpack.i.b16 %v908_v49, %v908_v49 }
 0x1e2   : > { %v865_v56 = vadd.bf16 %v2035_v31, %v842_v53 }
 0x1e3   : > { %v864_v57 = vadd.bf16 %v2035_v31, %v841_v55  ;;  %v2074_v53 = vrot.slane %v1135_v50, %v1979_v4 }
 0x1e4   : > { %v881_v61 = vmax.bf16 %v1782_v18, %v865_v56 }
 0x1e5   : > { %v1588_v58 = vpop.f32.mrb[28].mxu1  ;;  %v880_v59 = vmax.bf16 %v1782_v18, %v864_v57 }
 0x1e6   : > { %v758_v60 = vpop.f32.mrb[29].mxu1 }
 0x1e7   : > { %v1589_v62 = vpop.f32.mrb[30].mxu1  ;;  %1630 = vmatprep.mubr.bf16.mxu0 %v880_v59 }
 0x1e8   : > { %v844_v63 = vpack.c.bf16 %v1589_v62, %v1588_v58  ;;  %v761_v0 = vpop.f32.mrb[31].mxu1  ;;  %1631 = vmatmul.mubr.bf16.gmra.mrb[24].mxu0 %v881_v61 }
 0x1e9   : > { %v843_v1 = vpack.c.bf16 %v761_v0, %v758_v60 }
 0x1ea   : > { %v867_v2 = vadd.bf16 %v2035_v31, %v844_v63 }
 0x1eb   : > { %v866_v3 = vadd.bf16 %v2035_v31, %v843_v1 }
 0x1ec   : > { %v883_v9 = vmax.bf16 %v1782_v18, %v867_v2 }
 0x1ed   : > { %v1592_v5 = vpop.f32.mrb[32].mxu1  ;;  %v882_v6 = vmax.bf16 %v1782_v18, %v866_v3 }
 0x1ee   : > { %v774_v8 = vpop.f32.mrb[33].mxu1 }
 0x1ef   : > { %v1593_v10 = vpop.f32.mrb[34].mxu1  ;;  %1634 = vmatprep.mubr.bf16.mxu0 %v882_v6 }
 0x1f0   : > { %v846_v11 = vpack.c.bf16 %v1593_v10, %v1592_v5  ;;  %v777_v12 = vpop.f32.mrb[35].mxu1  ;;  %1635 = vmatmul.mubr.bf16.gmra.mrb[28].mxu0 %v883_v9 }
 0x1f1   : > { %v845_v14 = vpack.c.bf16 %v777_v12, %v774_v8 }
 0x1f2   : > { %v869_v15 = vadd.bf16 %v2035_v31, %v846_v11 }
 0x1f3   : > { %v868_v17 = vadd.bf16 %v2035_v31, %v845_v14 }
 0x1f4   : > { %v885_v13 = vmax.bf16 %v1782_v18, %v869_v15 }
 0x1f5   : > { %v1596_v19 = vpop.f32.mrb[36].mxu1  ;;  %v884_v21 = vmax.bf16 %v1782_v18, %v868_v17 }
 0x1f6   : > { %v790_v22 = vpop.f32.mrb[37].mxu1 }
 0x1f7   : > { %v1597_v16 = vpop.f32.mrb[38].mxu1  ;;  %1638 = vmatprep.mubr.bf16.mxu0 %v884_v21 }
 0x1f8   : > { %v848_v20 = vpack.c.bf16 %v1597_v16, %v1596_v19  ;;  %v793_v23 = vpop.f32.mrb[39].mxu1  ;;  %1639 = vmatmul.mubr.bf16.gmra.mrb[32].mxu0 %v885_v13 }
 0x1f9   : > { %v847_v24 = vpack.c.bf16 %v793_v23, %v790_v22 }
 0x1fa   : > { %v871_v25 = vadd.bf16 %v2035_v31, %v848_v20 }
 0x1fb   : > { %v870_v26 = vadd.bf16 %v2035_v31, %v847_v24 }
 0x1fc   : > { %v887_v29 = vmax.bf16 %v1782_v18, %v871_v25 }
 0x1fd   : > { %v1600_v27 = vpop.f32.mrb[40].mxu1  ;;  %v886_v28 = vmax.bf16 %v1782_v18, %v870_v26 }
 0x1fe   : > { %v806_v7 = vpop.f32.mrb[41].mxu1 }
 0x1ff   : > { %v1601_v30 = vpop.f32.mrb[42].mxu1  ;;  %1642 = vmatprep.mubr.bf16.mxu0 %v886_v28 }
 0x200   : > { %v850_v32 = vpack.c.bf16 %v1601_v30, %v1600_v27  ;;  %v809_v33 = vpop.f32.mrb[43].mxu1  ;;  %1643 = vmatmul.mubr.bf16.gmra.mrb[36].mxu0 %v887_v29 }
 0x201   : > { %v849_v34 = vpack.c.bf16 %v809_v33, %v806_v7 }
 0x202   : > { %v873_v35 = vadd.bf16 %v2035_v31, %v850_v32 }
 0x203   : > { %v872_v36 = vadd.bf16 %v2035_v31, %v849_v34 }
 0x204   : > { %v889_v40 = vmax.bf16 %v1782_v18, %v873_v35 }
 0x205   : > { %v1604_v37 = vpop.f32.mrb[44].mxu1  ;;  %v888_v38 = vmax.bf16 %v1782_v18, %v872_v36 }
 0x206   : > { %v822_v39 = vpop.f32.mrb[45].mxu1 }
 0x207   : > { %v1605_v41 = vpop.f32.mrb[46].mxu1  ;;  %1646 = vmatprep.mubr.bf16.mxu0 %v888_v38 }
 0x208   : > { %v852_v42 = vpack.c.bf16 %v1605_v41, %v1604_v37  ;;  %v825_v43 = vpop.f32.mrb[47].mxu1  ;;  %1647 = vmatmul.mubr.bf16.gmra.mrb[40].mxu0 %v889_v40 }
 0x209   : > { %v851_v44 = vpack.c.bf16 %v825_v43, %v822_v39 }
 0x20a   : > { %v875_v45 = vadd.bf16 %v2035_v31, %v852_v42 }
 0x20b   : > { %v874_v46 = vadd.bf16 %v2035_v31, %v851_v44 }
 0x20c   : > { %v891_v48 = vmax.bf16 %v1782_v18, %v875_v45 }
 0x20d   : > { %v890_v47 = vmax.bf16 %v1782_v18, %v874_v46 }
 0x20f   : > { %1650 = vmatprep.mubr.bf16.mxu0 %v890_v47 }
 0x210   : > { %1651 = vmatmul.mubr.bf16.gmra.mrb[44].mxu0 %v891_v48 }
 0x2ab   : > { %v1624_v51 = vpop.f32.mrb[16].mxu0 }
 0x2ac   : > { %v991_v52 = vpop.f32.mrb[17].mxu0 }
 0x2ad   : > { %v1625_v54 = vpop.f32.mrb[18].mxu0 }
 0x2ae   : > { %v1119_v31 = vpack.c.bf16 %v1625_v54, %v1624_v51  ;;  %v994_v55 = vpop.f32.mrb[19].mxu0 }
 0x2af   : > { %v1118_v56 = vpack.c.bf16 %v994_v55, %v991_v52 }
 0x2b0   : > { %v1142_v18 = vadd.bf16 %v2074_v53, %v1119_v31 }
 0x2b1   : > { %v1141_v57 = vadd.bf16 %v2074_v53, %v1118_v56 }
 0x2b2   : > { %v1420_v58 = vcombine.low %v1142_v18, %v1142_v18  ;;  %v1421_v59 = vcombine.high %v1142_v18, %v1142_v18 }
 0x2b3   : > { %v1418_v60 = vcombine.low %v1141_v57, %v1141_v57  ;;  %v1419_v61 = vcombine.high %v1141_v57, %v1141_v57  ;;  %v1628_v62 = vpop.f32.mrb[20].mxu0 }
 0x2b4   : > { %1271 = vst [vmem:[%s2080_s20 + $0x8] sm:$0xf] %v1420_v58  ;;  %1272 = vst [vmem:[%s2080_s20 + $0xc] sm:$0xf] %v1421_v59  ;;  %v1007_v4 = vpop.f32.mrb[21].mxu0 }
 0x2b5   : > { %1269 = vst [vmem:[%s2080_s20] sm:$0xf] %v1418_v60  ;;  %1270 = vst [vmem:[%s2080_s20 + $0x4] sm:$0xf] %v1419_v61  ;;  %v1629_v63 = vpop.f32.mrb[22].mxu0 }
 0x2b6   : > { %v1121_v0 = vpack.c.bf16 %v1629_v63, %v1628_v62  ;;  %v1010_v1 = vpop.f32.mrb[23].mxu0 }
 0x2b7   : > { %v1120_v2 = vpack.c.bf16 %v1010_v1, %v1007_v4 }
 0x2b8   : > { %v1144_v3 = vadd.bf16 %v2074_v53, %v1121_v0 }
 0x2b9   : > { %v1143_v5 = vadd.bf16 %v2074_v53, %v1120_v2 }
 0x2ba   : > { %v1424_v6 = vcombine.low %v1144_v3, %v1144_v3  ;;  %v1425_v8 = vcombine.high %v1144_v3, %v1144_v3 }
 0x2bb   : > { %v1422_v9 = vcombine.low %v1143_v5, %v1143_v5  ;;  %v1423_v10 = vcombine.high %v1143_v5, %v1143_v5  ;;  %v1632_v11 = vpop.f32.mrb[24].mxu0 }
 0x2bc   : > { %1275 = vst [vmem:[%s2080_s20 + $0x18] sm:$0xf] %v1424_v6  ;;  %1276 = vst [vmem:[%s2080_s20 + $0x1c] sm:$0xf] %v1425_v8  ;;  %v1023_v12 = vpop.f32.mrb[25].mxu0 }
 0x2bd   : > { %1273 = vst [vmem:[%s2080_s20 + $0x10] sm:$0xf] %v1422_v9  ;;  %1274 = vst [vmem:[%s2080_s20 + $0x14] sm:$0xf] %v1423_v10  ;;  %v1633_v14 = vpop.f32.mrb[26].mxu0 }
 0x2be   : > { %v1123_v15 = vpack.c.bf16 %v1633_v14, %v1632_v11  ;;  %v1026_v17 = vpop.f32.mrb[27].mxu0 }
 0x2bf   : > { %v1122_v19 = vpack.c.bf16 %v1026_v17, %v1023_v12 }
 0x2c0   : > { %v1146_v21 = vadd.bf16 %v2074_v53, %v1123_v15 }
 0x2c1   : > { %v1145_v22 = vadd.bf16 %v2074_v53, %v1122_v19 }
 0x2c2   : > { %v1428_v13 = vcombine.low %v1146_v21, %v1146_v21  ;;  %v1429_v16 = vcombine.high %v1146_v21, %v1146_v21 }
 0x2c3   : > { %v1426_v20 = vcombine.low %v1145_v22, %v1145_v22  ;;  %v1427_v23 = vcombine.high %v1145_v22, %v1145_v22  ;;  %v1636_v24 = vpop.f32.mrb[28].mxu0 }
 0x2c4   : > { %1279 = vst [vmem:[%s2080_s20 + $0x28] sm:$0xf] %v1428_v13  ;;  %1280 = vst [vmem:[%s2080_s20 + $0x2c] sm:$0xf] %v1429_v16  ;;  %v1039_v25 = vpop.f32.mrb[29].mxu0 }
 0x2c5   : > { %1277 = vst [vmem:[%s2080_s20 + $0x20] sm:$0xf] %v1426_v20  ;;  %1278 = vst [vmem:[%s2080_s20 + $0x24] sm:$0xf] %v1427_v23  ;;  %v1637_v26 = vpop.f32.mrb[30].mxu0 }
 0x2c6   : > { %v1125_v27 = vpack.c.bf16 %v1637_v26, %v1636_v24  ;;  %v1042_v28 = vpop.f32.mrb[31].mxu0 }
 0x2c7   : > { %v1124_v7 = vpack.c.bf16 %v1042_v28, %v1039_v25 }
 0x2c8   : > { %v1148_v29 = vadd.bf16 %v2074_v53, %v1125_v27 }
 0x2c9   : > { %v1147_v30 = vadd.bf16 %v2074_v53, %v1124_v7 }
 0x2ca   : > { %v1432_v32 = vcombine.low %v1148_v29, %v1148_v29  ;;  %v1433_v33 = vcombine.high %v1148_v29, %v1148_v29 }
 0x2cb   : > { %v1430_v34 = vcombine.low %v1147_v30, %v1147_v30  ;;  %v1431_v35 = vcombine.high %v1147_v30, %v1147_v30  ;;  %v1640_v36 = vpop.f32.mrb[32].mxu0 }
 0x2cc   : > { %1283 = vst [vmem:[%s2080_s20 + $0x38] sm:$0xf] %v1432_v32  ;;  %1284 = vst [vmem:[%s2080_s20 + $0x3c] sm:$0xf] %v1433_v33  ;;  %v1055_v37 = vpop.f32.mrb[33].mxu0 }
 0x2cd   : > { %1281 = vst [vmem:[%s2080_s20 + $0x30] sm:$0xf] %v1430_v34  ;;  %1282 = vst [vmem:[%s2080_s20 + $0x34] sm:$0xf] %v1431_v35  ;;  %v1641_v38 = vpop.f32.mrb[34].mxu0 }
 0x2ce   : > { %v1127_v39 = vpack.c.bf16 %v1641_v38, %v1640_v36  ;;  %v1058_v40 = vpop.f32.mrb[35].mxu0 }
 0x2cf   : > { %v1126_v41 = vpack.c.bf16 %v1058_v40, %v1055_v37 }
 0x2d0   : > { %v1150_v42 = vadd.bf16 %v2074_v53, %v1127_v39 }
 0x2d1   : > { %v1149_v43 = vadd.bf16 %v2074_v53, %v1126_v41 }
 0x2d2   : > { %v1436_v44 = vcombine.low %v1150_v42, %v1150_v42  ;;  %v1437_v45 = vcombine.high %v1150_v42, %v1150_v42 }
 0x2d3   : > { %v1434_v46 = vcombine.low %v1149_v43, %v1149_v43  ;;  %v1435_v47 = vcombine.high %v1149_v43, %v1149_v43  ;;  %v1644_v48 = vpop.f32.mrb[36].mxu0 }
 0x2d4   : > { %1287 = vst [vmem:[%s2080_s20 + $0x48] sm:$0xf] %v1436_v44  ;;  %1288 = vst [vmem:[%s2080_s20 + $0x4c] sm:$0xf] %v1437_v45  ;;  %v1071_v49 = vpop.f32.mrb[37].mxu0 }
 0x2d5   : > { %1285 = vst [vmem:[%s2080_s20 + $0x40] sm:$0xf] %v1434_v46  ;;  %1286 = vst [vmem:[%s2080_s20 + $0x44] sm:$0xf] %v1435_v47  ;;  %v1645_v50 = vpop.f32.mrb[38].mxu0 }
 0x2d6   : > { %v1129_v51 = vpack.c.bf16 %v1645_v50, %v1644_v48  ;;  %v1074_v52 = vpop.f32.mrb[39].mxu0 }
 0x2d7   : > { %v1128_v54 = vpack.c.bf16 %v1074_v52, %v1071_v49 }
 0x2d8   : > { %v1152_v31 = vadd.bf16 %v2074_v53, %v1129_v51 }
 0x2d9   : > { %v1151_v55 = vadd.bf16 %v2074_v53, %v1128_v54 }
 0x2da   : > { %v1440_v56 = vcombine.low %v1152_v31, %v1152_v31  ;;  %v1441_v18 = vcombine.high %v1152_v31, %v1152_v31 }
 0x2db   : > { %v1438_v57 = vcombine.low %v1151_v55, %v1151_v55  ;;  %v1439_v58 = vcombine.high %v1151_v55, %v1151_v55  ;;  %v1648_v59 = vpop.f32.mrb[40].mxu0 }
 0x2dc   : > { %1291 = vst [vmem:[%s2080_s20 + $0x58] sm:$0xf] %v1440_v56  ;;  %1292 = vst [vmem:[%s2080_s20 + $0x5c] sm:$0xf] %v1441_v18  ;;  %v1087_v60 = vpop.f32.mrb[41].mxu0 }
 0x2dd   : > { %1289 = vst [vmem:[%s2080_s20 + $0x50] sm:$0xf] %v1438_v57  ;;  %1290 = vst [vmem:[%s2080_s20 + $0x54] sm:$0xf] %v1439_v58  ;;  %v1649_v61 = vpop.f32.mrb[42].mxu0 }
 0x2de   : > { %v1131_v62 = vpack.c.bf16 %v1649_v61, %v1648_v59  ;;  %v1090_v4 = vpop.f32.mrb[43].mxu0 }
 0x2df   : > { %v1130_v63 = vpack.c.bf16 %v1090_v4, %v1087_v60 }
 0x2e0   : > { %v1154_v0 = vadd.bf16 %v2074_v53, %v1131_v62 }
 0x2e1   : > { %v1153_v1 = vadd.bf16 %v2074_v53, %v1130_v63 }
 0x2e2   : > { %v1444_v2 = vcombine.low %v1154_v0, %v1154_v0  ;;  %v1445_v3 = vcombine.high %v1154_v0, %v1154_v0 }
 0x2e3   : > { %v1442_v5 = vcombine.low %v1153_v1, %v1153_v1  ;;  %v1443_v6 = vcombine.high %v1153_v1, %v1153_v1  ;;  %v1652_v8 = vpop.f32.mrb[44].mxu0 }
 0x2e4   : > { %1295 = vst [vmem:[%s2080_s20 + $0x68] sm:$0xf] %v1444_v2  ;;  %1296 = vst [vmem:[%s2080_s20 + $0x6c] sm:$0xf] %v1445_v3  ;;  %v1103_v9 = vpop.f32.mrb[45].mxu0 }
 0x2e5   : > { %1293 = vst [vmem:[%s2080_s20 + $0x60] sm:$0xf] %v1442_v5  ;;  %1294 = vst [vmem:[%s2080_s20 + $0x64] sm:$0xf] %v1443_v6  ;;  %v1653_v10 = vpop.f32.mrb[46].mxu0 }
 0x2e6   : > { %v1133_v11 = vpack.c.bf16 %v1653_v10, %v1652_v8  ;;  %v1106_v12 = vpop.f32.mrb[47].mxu0 }
 0x2e7   : > { %v1132_v14 = vpack.c.bf16 %v1106_v12, %v1103_v9 }
 0x2e8   : > { %v1156_v15 = vadd.bf16 %v2074_v53, %v1133_v11 }
 0x2e9   : > { %v1155_v17 = vadd.bf16 %v2074_v53, %v1132_v14 }
 0x2ea   : > { %v1448_v19 = vcombine.low %v1156_v15, %v1156_v15  ;;  %v1449_v21 = vcombine.high %v1156_v15, %v1156_v15 }
 0x2eb   : > { %v1446_v22 = vcombine.low %v1155_v17, %v1155_v17  ;;  %v1447_v13 = vcombine.high %v1155_v17, %v1155_v17 }
 0x2ec   : > { %1299 = vst [vmem:[%s2080_s20 + $0x78] sm:$0xf] %v1448_v19  ;;  %1300 = vst [vmem:[%s2080_s20 + $0x7c] sm:$0xf] %v1449_v21 }
 0x2ed   : > { %1297 = vst [vmem:[%s2080_s20 + $0x70] sm:$0xf] %v1446_v22  ;;  %1298 = vst [vmem:[%s2080_s20 + $0x74] sm:$0xf] %v1447_v13 }
 0x2ee   : > { %1731 = shalt.err (!%p1728_p3)
}
 0x2ef   : > { %s1732_s16 = scalar_lea.hbm %s2129_s8, 2048  ;;  %s1736_s19 = scalar_lea.hbm %s2187_s7, 4096 }
 0x2f0   : > { %p1733_p4 = scmp.ne.s32.totalorder %s2129_s8, %s1732_s16  ;;  %p1737_p9 = scmp.lt.u32.totalorder %s2129_s8, %s2187_s7 }
 0x2f1   : > { %p1738_p10 = scmp.lt.u32.totalorder %s1736_s19, %s1732_s16  ;;  %p1740_p12 = scmp.lt.u32.totalorder %s1732_s16, %s2129_s8 }
 0x2f2   : > { %p1734_p7 = pnand %p1733_p4, %p1864_p5 }
 0x2f3   : > { %p1739_p11 = por %p1738_p10, %p1737_p9 }
 0x2f4   : > { %p1735_p8 = pneg %p1734_p7 }
 0x2f5   : > { %p1741_p13 = por %p1740_p12, %p1739_p11 }
 0x2f7   : > { %p1742_p0 = pnand %p1741_p13, %p1735_p8 }
 0x2f9   : > { %1745 = shalt.err (!%p1742_p0)
}
 0x2fa   : > { %s1784_s29 = smov 64   ;;  %s1785_s23 = smov 4  }
 0x2fb   : > { %1658 = dma.vmem_to_hbm [thread:$0]  (%p1864_p5), %s2131_s22, 2048, %s2129_s8, %s2139_s28, %s1784_s29, %s1784_s29, %s1785_s23  }
 0x2fc PF: > { %p1664_p1 = scmp.ge.s32.totalorder %s1780_s27, 2  ;;  %s1330_s9 = sand.u32 1, %s1768_s24  }
 0x2fd   : > { %s1331_s13 = scalar_lea.sflag [#allocation3], %s1330_s9 }
 0x2fe   : > { %p1661_p2 = pnand %p1664_p1, %p1868_p6 }
 0x300   : > { %1763 = dma.done.wait (!%p1661_p2), %s1331_s13, 2048  }
 0x301   : > { %1765 = vsyncadd (!%p1661_p2), %s1331_s13, 4294965248  ;;  %p17_p3 = scmp.ge.s32.totalorder %s1851_s30, 4   ;;  %s2190_s24 = smov %s1772_s25 }
 0x302   : > { %s2191_s25 = smov %s1776_s26  ;;  %s2192_s26 = smov %s1862_s10 }
 0x303   : > { %s2193_s27 = smov %s1851_s30  ;;  %19 = sbr.rel (!%p17_p3) target bundleno = 3 (0x3), region = 83 }
 0x30a   :  { %1336 = vsyncpa [#allocation3], 1 }
 0x30b   :  { %1338 = vsyncpa [#allocation3 + $0x1], 1 }

</bundles_post_ra>
